<compile_context>
chip_gen: v5e
topology: v5e:2x2
jax: 0.10.0
libtpu: 0.0.40
codegen_flags: <defaults>
</compile_context>

<pallas_src>
import functools

import jax
import jax.numpy as jnp
from jax.experimental import pallas as pl
from jax.experimental.pallas import tpu as pltpu


def _negbin_fused_kernel(h_ref, w_ref, b_ref, r_ref, p_ref, *, out_size, logit):
    # One fused matmul: [TB, IN] @ [IN, 2*OUT] -> [TB, 2*OUT], f32 accumulate.
    y = jnp.dot(h_ref[...], w_ref[...], preferred_element_type=jnp.float32)
    y = y + b_ref[...].astype(jnp.float32)

    y_mu = y[:, :out_size]       # 128-aligned slice when OUT % 128 == 0
    y_lg = y[:, out_size:]

    # Numerically-stable softplus, f32, on the mu half only (EUP slot).
    r = jnp.maximum(y_mu, 0.0) + jnp.log1p(jnp.exp(-jnp.abs(y_mu)))
    r_ref[...] = r.astype(r_ref.dtype)

    if logit:
        p_ref[...] = y_lg.astype(p_ref.dtype)
    else:
        p_ref[...] = jax.nn.sigmoid(y_lg).astype(p_ref.dtype)


def _round_up(x, m):
    return ((x + m - 1) // m) * m


def negative_binomial_forward(h, w_mu, b_mu, w_logit, b_logit, *,
                              logit=True, block_b=1024):
    """h: [B, IN]; w_*: [IN, OUT]; b_*: [1, OUT]. Returns (r_t, p_t): [B, OUT]."""
    B, IN = h.shape
    OUT = w_mu.shape[1]
    TWO = 2 * OUT
    out_dtype = h.dtype

    # Fuse the two Linear layers into a single weight / bias (tiny, parameter-
    # side layout plumbing; amortized / fused by XLA).
    w = jnp.concatenate([w_mu, w_logit], axis=1)      # [IN, 2*OUT]
    b = jnp.concatenate([b_mu, b_logit], axis=1)      # [1, 2*OUT]

    # Batch tile: multiple of 8 sublanes, capped at block_b, and no larger
    # than ~ceil(B/2) so the parallel batch axis has >= 2 grid steps for the
    # two v7x TensorCores.  No padding of h: grid = cdiv and Pallas masks the
    # partial final block (softplus on the OOB garbage rows is harmless; those
    # rows are never written back).
    tb = max(8, min(block_b, _round_up(-(-B // 2), 8)))
    grid = (pl.cdiv(B, tb),)

    kernel = functools.partial(_negbin_fused_kernel, out_size=OUT, logit=logit)

    itemsize = jnp.dtype(out_dtype).itemsize
    cost = pl.CostEstimate(
        flops=2 * B * IN * TWO,
        transcendentals=2 * B * OUT + (B * OUT if not logit else 0),
        bytes_accessed=(h.size * h.dtype.itemsize
                        + w.size * w.dtype.itemsize
                        + b.size * b.dtype.itemsize
                        + 2 * B * OUT * itemsize),
    )

    r_t, p_t = pl.pallas_call(
        kernel,
        out_shape=(jax.ShapeDtypeStruct((B, OUT), out_dtype),
                   jax.ShapeDtypeStruct((B, OUT), out_dtype)),
        grid_spec=pltpu.PrefetchScalarGridSpec(
            num_scalar_prefetch=0,
            grid=grid,
            in_specs=[
                pl.BlockSpec((tb, IN), lambda i: (i, 0)),    # streamed h tiles
                pl.BlockSpec((IN, TWO), lambda i: (0, 0)),   # resident fused W
                pl.BlockSpec((1, TWO), lambda i: (0, 0)),    # resident fused b
            ],
            out_specs=(
                pl.BlockSpec((tb, OUT), lambda i: (i, 0)),   # r_t
                pl.BlockSpec((tb, OUT), lambda i: (i, 0)),   # p_t
            ),
        ),
        compiler_params=pltpu.CompilerParams(
            dimension_semantics=("parallel",),   # shard batch tiles across TCs
        ),
        cost_estimate=cost,
    )(h, w, b)

    return r_t, p_t


if __name__ == "__main__":
    # Small shapes consistent with the module: h_{i,t} hidden size -> embedding size.
    B, INPUT_SIZE, OUTPUT_SIZE = 8, 32, 32

    key = jax.random.PRNGKey(0)
    k_h, k_wm, k_bm, k_wl, k_bl = jax.random.split(key, 5)

    # Deterministic parameter init (mimic nn.Linear uniform(-1/sqrt(in), 1/sqrt(in))).
    bound = 1.0 / (INPUT_SIZE ** 0.5)
    h = jax.random.normal(k_h, (B, INPUT_SIZE), dtype=jnp.float32)
    w_mu = jax.random.uniform(k_wm, (INPUT_SIZE, OUTPUT_SIZE), jnp.float32, -bound, bound)
    b_mu = jax.random.uniform(k_bm, (1, OUTPUT_SIZE), jnp.float32, -bound, bound)
    w_logit = jax.random.uniform(k_wl, (INPUT_SIZE, OUTPUT_SIZE), jnp.float32, -bound, bound)
    b_logit = jax.random.uniform(k_bl, (1, OUTPUT_SIZE), jnp.float32, -bound, bound)

    r_t, p_t = negative_binomial_forward(h, w_mu, b_mu, w_logit, b_logit)
    jax.block_until_ready((r_t, p_t))

    # Reference check in plain JAX (logit=True path).
    r_ref = jax.nn.softplus(h @ w_mu + b_mu)
    p_ref = h @ w_logit + b_logit
    assert r_t.shape == (B, OUTPUT_SIZE) and p_t.shape == (B, OUTPUT_SIZE)
    assert jnp.allclose(r_t, r_ref, atol=1e-5, rtol=1e-5)
    assert jnp.allclose(p_t, p_ref, atol=1e-5, rtol=1e-5)

    # logit=False path (sigmoid on the logits head).
    r_s, p_s = negative_binomial_forward(h, w_mu, b_mu, w_logit, b_logit, logit=False)
    jax.block_until_ready((r_s, p_s))
    assert jnp.allclose(r_s, r_ref, atol=1e-5, rtol=1e-5)
    assert jnp.allclose(p_s, jax.nn.sigmoid(h @ w_logit + b_logit), atol=1e-5, rtol=1e-5)

    # Batch that is not a multiple of the tile: exercises the cdiv-grid /
    # partial-final-block path (no wrapper-side padding or slicing).
    B2 = 1000
    h2 = jax.random.normal(jax.random.PRNGKey(1), (B2, INPUT_SIZE), dtype=jnp.float32)
    r2, p2 = negative_binomial_forward(h2, w_mu, b_mu, w_logit, b_logit)
    jax.block_until_ready((r2, p2))
    assert r2.shape == (B2, OUTPUT_SIZE) and p2.shape == (B2, OUTPUT_SIZE)
    assert jnp.allclose(r2, jax.nn.softplus(h2 @ w_mu + b_mu), atol=1e-5, rtol=1e-5)
    assert jnp.allclose(p2, h2 @ w_logit + b_logit, atol=1e-5, rtol=1e-5)

    print("KERNEL_OK")
</pallas_src>

<mosaic_0001>
module attributes {stable_mosaic.version = 11 : i64} {
  func.func @_negbin_fused_kernel(%arg0: i32, %arg1: memref<8x32xf32, #tpu.memory_space<vmem>>, %arg2: memref<32x64xf32, #tpu.memory_space<vmem>>, %arg3: memref<1x64xf32, #tpu.memory_space<vmem>>, %arg4: memref<8x32xf32, #tpu.memory_space<vmem>>, %arg5: memref<8x32xf32, #tpu.memory_space<vmem>>) attributes {dimension_semantics = [#tpu.dimension_semantics<parallel>], iteration_bounds = array<i64: 1>, scalar_prefetch = 0 : i64, scratch_operands = 0 : i64, tpu.core_type = #tpu.core_type<tc>, window_params = [{transform_indices = @transform_0, window_bounds = array<i64: 8, 32>}, {pipeline_mode = #tpu.pipeline_mode<synchronous>, transform_indices = @transform_1, window_bounds = array<i64: 32, 64>}, {pipeline_mode = #tpu.pipeline_mode<synchronous>, transform_indices = @transform_2, window_bounds = array<i64: 1, 64>}, {transform_indices = @transform_3, window_bounds = array<i64: 8, 32>}, {transform_indices = @transform_4, window_bounds = array<i64: 8, 32>}]} {
    %c0 = arith.constant 0 : index
    %c0_0 = arith.constant 0 : index
    %0 = vector.load %arg1[%c0, %c0_0] : memref<8x32xf32, #tpu.memory_space<vmem>>, vector<8x32xf32>
    %c0_1 = arith.constant 0 : index
    %c0_2 = arith.constant 0 : index
    %1 = vector.load %arg2[%c0_1, %c0_2] : memref<32x64xf32, #tpu.memory_space<vmem>>, vector<32x64xf32>
    %cst = arith.constant dense<0.000000e+00> : vector<8x64xf32>
    %2 = tpu.matmul %0, %1, %cst {dimension_numbers = #tpu.dot_dimension_numbers<[1], [0], [0], [1], [0, 0, 1, 1], [], []>} : vector<8x32xf32>, vector<32x64xf32>, vector<8x64xf32> -> vector<8x64xf32>
    %c0_3 = arith.constant 0 : index
    %c0_4 = arith.constant 0 : index
    %3 = vector.load %arg3[%c0_3, %c0_4] : memref<1x64xf32, #tpu.memory_space<vmem>>, vector<1x64xf32>
    %4 = vector.broadcast %3 : vector<1x64xf32> to vector<8x64xf32>
    %5 = arith.addf %2, %4 : vector<8x64xf32>
    %6 = vector.extract_strided_slice %5 {offsets = [0, 0], sizes = [8, 32], strides = [1, 1]} : vector<8x64xf32> to vector<8x32xf32>
    %7 = vector.extract_strided_slice %5 {offsets = [0, 32], sizes = [8, 32], strides = [1, 1]} : vector<8x64xf32> to vector<8x32xf32>
    %cst_5 = arith.constant 0.000000e+00 : f32
    %8 = vector.broadcast %cst_5 : f32 to vector<8x32xf32>
    %9 = arith.maximumf %6, %8 : vector<8x32xf32>
    %10 = math.absf %6 : vector<8x32xf32>
    %cst_6 = arith.constant 0.000000e+00 : f32
    %11 = vector.broadcast %cst_6 : f32 to vector<8x32xf32>
    %12 = arith.subf %11, %10 : vector<8x32xf32>
    %13 = math.exp %12 : vector<8x32xf32>
    %14 = math.log1p %13 : vector<8x32xf32>
    %15 = arith.addf %9, %14 : vector<8x32xf32>
    %c0_7 = arith.constant 0 : index
    %c0_8 = arith.constant 0 : index
    %16 = vector.load %arg4[%c0_7, %c0_8] : memref<8x32xf32, #tpu.memory_space<vmem>>, vector<8x32xf32>
    tpu.vector_store %arg4[%c0_7, %c0_8], %15 {strides = array<i32>} : memref<8x32xf32, #tpu.memory_space<vmem>>, vector<8x32xf32>,
    %c0_9 = arith.constant 0 : index
    %c0_10 = arith.constant 0 : index
    %17 = vector.load %arg5[%c0_9, %c0_10] : memref<8x32xf32, #tpu.memory_space<vmem>>, vector<8x32xf32>
    tpu.vector_store %arg5[%c0_9, %c0_10], %7 {strides = array<i32>} : memref<8x32xf32, #tpu.memory_space<vmem>>, vector<8x32xf32>,
    return
  }
  func.func @transform_0(%arg0: i32) -> (i32, i32) {
    %c0_i32 = arith.constant 0 : i32
    %c0_i32_0 = arith.constant 0 : i32
    return %arg0, %c0_i32 : i32, i32
  }
  func.func @transform_1(%arg0: i32) -> (i32, i32) {
    %c0_i32 = arith.constant 0 : i32
    %c0_i32_0 = arith.constant 0 : i32
    %c0_i32_1 = arith.constant 0 : i32
    return %c0_i32, %c0_i32_0 : i32, i32
  }
  func.func @transform_2(%arg0: i32) -> (i32, i32) {
    %c0_i32 = arith.constant 0 : i32
    %c0_i32_0 = arith.constant 0 : i32
    %c0_i32_1 = arith.constant 0 : i32
    return %c0_i32, %c0_i32_0 : i32, i32
  }
  func.func @transform_3(%arg0: i32) -> (i32, i32) {
    %c0_i32 = arith.constant 0 : i32
    %c0_i32_0 = arith.constant 0 : i32
    return %arg0, %c0_i32 : i32, i32
  }
  func.func @transform_4(%arg0: i32) -> (i32, i32) {
    %c0_i32 = arith.constant 0 : i32
    %c0_i32_0 = arith.constant 0 : i32
    return %arg0, %c0_i32 : i32, i32
  }
}

</mosaic_0001>

<bundles_post_ra>
// kernel: tpu_custom_call.1
= control target key start
LH: loop header
LB: loop body
LE: loop exit
PB: predicated region body
PF: predicated region fallthrough
CT: control target
= control target key end

     0   :  { %10 = vsyncpa [#allocation3], 0  ;;  %s303_s0 = inlined_call_operand.hbm [shape: f32[8,32], index: 0, kind: input, shape index: {}]   ;;  %s304_s1 = inlined_call_operand.hbm [shape: f32[32,64], index: 1, kind: input, shape index: {}]   ;;  %s305_s2 = inlined_call_operand.vmem [shape: f32[1,64], index: 2, kind: input, shape index: {}]   ;;  %s306_s3 = inlined_call_operand.hbm [shape: f32[8,32], index: 3, kind: output, shape index: {0}]   ;;  %s307_s4 = inlined_call_operand.hbm [shape: f32[8,32], index: 4, kind: output, shape index: {1}]  }
   0x1   :  { %11 = vsyncpa [#allocation6], 0 }
   0x2   :  { %12 = vsyncpa [#allocation4], 0 }
   0x3   :  { %13 = vsyncpa [#allocation9], 0  ;;  %s19_s17 = sshll.u32 %s303_s0, 4  ;;  %s253_s18 = smov [#allocation2]   ;;  %s20_s17 = int_to_ptr.hbm [resolvable:$true] %s19_s17 }
   0x4   :  { %s21_s19 = sshll.u32 %s253_s18, 4  ;;  %s29_s22 = sshll.u32 %s304_s1, 4  ;;  %s22_s19 = int_to_ptr.vmem [resolvable:$true] %s21_s19  ;;  %s30_s22 = int_to_ptr.hbm [resolvable:$true] %s29_s22 }
   0x5   :  { %24 = dma.hbm_to_vmem [thread:$0]  %s20_s17, 128, %s22_s19, [#allocation3]  }
   0x6   :  { %s254_s23 = smov [#allocation5]   ;;  %s255_s25 = smov 128  }
   0x7   :  { %s31_s24 = sshll.u32 %s254_s23, 4  ;;  %s256_s26 = smov 8   ;;  %s32_s24 = int_to_ptr.vmem [resolvable:$true] %s31_s24 }
   0x8   :  { %37 = dma.hbm_to_vmem [thread:$0]  %s30_s22, 512, %s32_s24, [#allocation6], %s255_s25, %s255_s25, %s256_s26  }
   0x9   :  { %245 = dma.done.wait [#allocation3], 128  }
   0xa   :  { %246 = vsyncadd [#allocation3], 4294967168 }
   0xb   :  { %247 = dma.done.wait [#allocation6], 512  }
   0xc   :  { %248 = vsyncadd [#allocation6], 4294966784  ;;  %v52_v0 = vld [vmem:[#allocation5 + $0x18] sm:$0xff]  ;;  %v51_v1 = vld [vmem:[#allocation5 + $0x10] sm:$0xff]  ;;  %vm57_vm0 = vcmask 261120   ;;  %s257_s27 = smov 96  }
   0xd   :  { %73 = vmatpush.msra.mxu0 %v52_v0  ;;  %v50_v2 = vld [vmem:[#allocation5 + $0x8] sm:$0xff]  ;;  %v49_v3 = vld [vmem:[#allocation5] sm:$0xff]  ;;  %v48_v4 = vld [vmem:[#allocation2] sm:$0xff]  ;;  %s258_s28 = smov [#allocation7]   ;;  %s109_s5 = sshll.u32 %s306_s3, 4  ;;  %s110_s5 = int_to_ptr.hbm [resolvable:$true] %s109_s5 }
   0xe   :  { %v144_v5 = vld [vmem:[%s305_s2] ss:$0 sm:$0xff]  ;;  %s107_s29 = sshll.u32 %s258_s28, 4  ;;  %s259_s6 = smov [#allocation8]   ;;  %s108_s29 = int_to_ptr.vmem [resolvable:$true] %s107_s29 }
   0xf   :  { %74 = vmatpush.msra.mxu0 %v51_v1  ;;  %s118_s7 = sshll.u32 %s259_s6, 4  ;;  %s120_s10 = sshll.u32 %s307_s4, 4  ;;  %s119_s7 = int_to_ptr.vmem [resolvable:$true] %s118_s7  ;;  %s121_s10 = int_to_ptr.hbm [resolvable:$true] %s120_s10 }
  0x11   :  { %75 = vmatpush.msra.mxu0 %v50_v2 }
  0x13   :  { %76 = vmatpush.msra.mxu0 %v49_v3 }
  0x14   :  { %136 = vmatmul.msk.f32.vlgmr.msra.gmra.mxu0 %vm57_vm0, %v48_v4 }
  0x91   :  { %v78_v6 = vpop.f32.mrf.mxu0 }
  0x92   :  { %v79_v7 = vadd.f32 %v144_v5, %v78_v6 }
  0x94   :  { %v82_v8 = vand.u32 2147483647, %v79_v7  ;;  %98 = vrot.lane.b32.xlu0 %v79_v7, %s257_s27  ;;  %v81_v19 = vmax.f32 %v79_v7, 0.0 }
  0x96   :  { %v83_v9 = vsub.f32 0.0, %v82_v8 }
  0x98   :  { %v84_v10 = vmul.f32 1.442695, %v83_v9 }
  0x9a   :  { %145 = vpow2.f32 %v84_v10 }
  0xa0   :  { %v146_v11 = vpop.eup %145 }
  0xa1   :  { %v86_v12 = vadd.f32 1.0, %v146_v11  ;;  %v89_v13 = vmul.f32 -0.5, %v146_v11  ;;  %v92_v15 = vand.u32 2147483647, %v146_v11 }
  0xa3   :  { %147 = vlog2.f32 %v86_v12  ;;  %v90_v14 = vadd.f32 1.0, %v89_v13  ;;  %vm93_vm1 = vcmp.lt.f32.partialorder %v92_v15, 0.0004427343 }
  0xa5   :  { %v91_v18 = vmul.f32 %v146_v11, %v90_v14 }
  0xa9   :  { %v148_v16 = vpop.eup %147 }
  0xaa   :  { %v88_v17 = vmul.f32 0.6931472, %v148_v16 }
  0xac   :  { %v94_v20 = vsel %vm93_vm1, %v91_v18, %v88_v17 }
  0xad   :  { %v95_v21 = vadd.f32 %v94_v20, %v81_v19 }
  0xaf   :  { %96 = vst.msk [vmem:[#allocation7] sm:$0xff] %vm57_vm0, %v95_v21 }
  0xb0   :  { %112 = dma.vmem_to_hbm [thread:$0]  %s108_s29, 128, %s110_s5, [#allocation4]  }
 0x106   :  { %v99_v22 = vpop.permute.xlu0 %98 }
 0x107   :  { %101 = vst.msk [vmem:[#allocation8] sm:$0xff] %vm57_vm0, %v99_v22 }
 0x108   :  { %123 = dma.vmem_to_hbm [thread:$0]  %s119_s7, 128, %s121_s10, [#allocation9]  }
 0x109   :  { %249 = dma.done.wait [#allocation4], 128  }
 0x10a   :  { %250 = vsyncadd [#allocation4], 4294967168 }
 0x10b   :  { %251 = dma.done.wait [#allocation9], 128  }
 0x10c   :  { %252 = vsyncadd [#allocation9], 4294967168 }
 0x10d   :  { %132 = vsyncpa [#allocation3], 1 }
 0x10e   :  { %133 = vsyncpa [#allocation6], 1 }
 0x10f   :  { %134 = vsyncpa [#allocation4], 1 }
 0x110   :  { %135 = vsyncpa [#allocation9], 1 }

</bundles_post_ra>
